<compile_context>
chip_gen: v6e
topology: v6e:2x2x1
jax: 0.10.0
libtpu: 0.0.40
codegen_flags: <defaults>
</compile_context>

<pallas_src>
import jax
import jax.numpy as jnp
from jax.experimental import pallas as pl
from jax.experimental.pallas import tpu as pltpu


def _round_up(x, m):
    return ((x + m - 1) // m) * m


_MAX_TILE_M = 4096   # 256-aligned cap (256x256 MXU on v6e/v7x)


def _tpu_topology():
    """(per-core VMEM capacity bytes, TensorCores per chip), safe fallbacks."""
    cap, cores = 64 * 1024 * 1024, 1          # conservative: v7x per-TC VMEM, 1 TC
    try:
        info = pltpu.get_tpu_info()
        cap = int(getattr(info, "vmem_capacity_bytes", cap))
        for name in ("num_tensorcores", "tensorcore_count", "num_cores",
                     "cores_per_chip", "core_count"):
            v = getattr(info, name, None)
            if isinstance(v, int) and v > 0:
                cores = v
                break
    except Exception:
        pass
    return cap, cores


def _working_set_bytes(tile_m, k, e, in_bytes, out_bytes):
    # 2x double-buffered patches tile + 1x resident weight (pl.Buffered(1))
    # + 2x double-buffered output tile.
    return 2 * tile_m * k * in_bytes + k * e * in_bytes + 2 * tile_m * e * out_bytes


def _choose_tile_m(m, k, e, in_bytes, out_bytes, budget, cores):
    """Largest 256-aligned M tile whose working set fits `budget`, adjusted so
    multi-TensorCore chips get >= 2 (preferably even) grid steps."""
    need_min = _working_set_bytes(256, k, e, in_bytes, out_bytes)
    if need_min > budget:
        # TODO(synk): add a K/E-tiled reduction grid for very large C*P*P / E.
        raise NotImplementedError(
            f"PatchEmbedding working set at the minimal tile ({need_min} B) "
            f"exceeds the VMEM budget ({budget} B); K/E tiling required.")

    cap = min(_MAX_TILE_M, _round_up(m, 256))
    # Ensure >= 2 grid steps so a multi-TensorCore chip (v7x) can shard the
    # single "parallel" M axis; on single-core chips only split once tiles
    # stay >= 2048 (v5e is MXU-bound -- smaller tiles show up in wall clock).
    min_split_tile = 256 if cores >= 2 else 2048
    if m >= 2 * min_split_tile:
        cap = min(cap, max(256, _round_up(pl.cdiv(m, 2), 256)))

    tile = 256
    t = 256
    while t <= cap:
        if _working_set_bytes(t, k, e, in_bytes, out_bytes) <= budget:
            tile = t
        t += 256

    # Prefer an even number of grid steps on multi-core chips (odd counts
    # leave one core ~1/grid idle).
    if cores >= 2:
        g = pl.cdiv(m, tile)
        if g > 1 and g % 2 == 1:
            t_even = _round_up(pl.cdiv(m, g + 1), 256)
            if (t_even >= 256
                    and _working_set_bytes(t_even, k, e, in_bytes, out_bytes) <= budget
                    and pl.cdiv(m, t_even) % 2 == 0):
                tile = t_even
    return tile


def _patch_embed_matmul_kernel(p_ref, w_ref, o_ref):
    # p_ref: (TILE_M, K) bf16, w_ref: (K, E) bf16, o_ref: (TILE_M, E) out_dtype.
    # f32 accumulation on the MXU; cast to the output dtype inside the kernel
    # so no extra HBM pass is needed afterwards.
    o_ref[...] = jnp.dot(
        p_ref[...], w_ref[...], preferred_element_type=jnp.float32
    ).astype(o_ref.dtype)


def patch_embedding_forward(x, weight, patch_size, *,
                            compute_dtype=jnp.bfloat16, out_dtype=None):
    """PatchEmbedding forward: Conv2d(k=s=P, bias=False) -> flatten(2) -> permute.

    x:      (B, C, H, W) activations.
    weight: (E, C, P, P) Conv2d weight (bias=False).
    Returns (B, num_patches, E) in `out_dtype` (default: compute_dtype).
    """
    if out_dtype is None:
        out_dtype = compute_dtype
    B, C, H, W = x.shape
    E = weight.shape[0]
    P = patch_size
    Hp, Wp = H // P, W // P
    num_patches = Hp * Wp

    # Conv2d(kernel=stride=P) drops trailing rows/cols not covering a full
    # patch; make the truncation explicit.  Cast to the compute dtype *before*
    # the transpose glue so any materialized patches intermediate is bf16.
    x = x[:, :, :Hp * P, :Wp * P].astype(compute_dtype)

    # --- glue: extract non-overlapping PxP patches, flatten K in (c, ph, pw)
    # order to match Conv2d's OIHW contraction order ---
    patches = x.reshape(B, C, Hp, P, Wp, P)
    patches = jnp.transpose(patches, (0, 2, 4, 1, 3, 5))      # (B, Hp, Wp, C, P, P)
    patches = patches.reshape(B * num_patches, C * P * P)     # (M, K)

    # Conv2d weight (E, C, P, P) -> (K, E)
    w_mat = weight.reshape(E, C * P * P).T.astype(compute_dtype)

    M, K = patches.shape

    # Lane-dense padding: K (MXU feed) and E (output lanes) -> multiples of 128.
    K_pad = _round_up(K, 128)
    E_pad = _round_up(E, 128)
    if K_pad != K:
        patches = jnp.pad(patches, ((0, 0), (0, K_pad - K)))
        w_mat = jnp.pad(w_mat, ((0, K_pad - K), (0, 0)))
    if E_pad != E:
        w_mat = jnp.pad(w_mat, ((0, 0), (0, E_pad - E)))

    in_bytes = jnp.dtype(compute_dtype).itemsize
    out_bytes = jnp.dtype(out_dtype).itemsize

    vmem_cap, cores = _tpu_topology()
    # Soft working-set budget: ~half of per-core VMEM, capped at 48 MiB so we
    # never overshoot v7x's 64 MiB/TC even if capacity is reported per chip.
    budget = max(16 * 1024 * 1024, min(vmem_cap // 2, 48 * 1024 * 1024))

    tile_m = _choose_tile_m(M, K_pad, E_pad, in_bytes, out_bytes, budget, cores)
    grid_m = pl.cdiv(M, tile_m)
    need = _working_set_bytes(tile_m, K_pad, E_pad, in_bytes, out_bytes)
    # Scoped-VMEM limit from the actual working set + Mosaic scratch headroom.
    vmem_limit = int(max(32 * 1024 * 1024, need + 16 * 1024 * 1024))

    cost = pl.CostEstimate(
        flops=2 * M * K_pad * E_pad,
        transcendentals=0,
        bytes_accessed=(M * K_pad * in_bytes + K_pad * E_pad * in_bytes
                        + M * E_pad * out_bytes),
    )

    out_flat = pl.pallas_call(
        _patch_embed_matmul_kernel,
        out_shape=jax.ShapeDtypeStruct((M, E_pad), out_dtype),
        grid=(grid_m,),
        in_specs=[
            # M-tiled patches: double-buffered by default.
            pl.BlockSpec((tile_m, K_pad), lambda i: (i, 0)),
            # Resident weight: constant index map, fetched once -> one buffer.
            pl.BlockSpec((K_pad, E_pad), lambda i: (0, 0),
                         pipeline_mode=pl.Buffered(1)),
        ],
        out_specs=pl.BlockSpec((tile_m, E_pad), lambda i: (i, 0)),
        compiler_params=pltpu.CompilerParams(
            dimension_semantics=("parallel",),          # shard M across TCs (v7x)
            vmem_limit_bytes=vmem_limit,
            # Best-effort hint: fuse the pad/convert (and, if XLA can, the
            # patch transpose) producers into the kernel's input DMA.
            allow_input_fusion=[True, True],
        ),
        cost_estimate=cost,
    )(patches, w_mat)

    if E_pad != E:
        # Only fires for embed dims that are not multiples of 128 (toy
        # configs); production ViT widths return the kernel output directly.
        out_flat = out_flat[:, :E]
    # Dropout(p=0.0) == identity; kernel already wrote out_dtype (no extra pass).
    return out_flat.reshape(B, num_patches, E)


if __name__ == "__main__":
    # Small shapes consistent with the module: image 16x16, patch 4, C=4, E=32.
    batch, in_channels, image_size, patch_size, embed_dim = 2, 4, 16, 4, 32

    key = jax.random.PRNGKey(0)
    kx, kw = jax.random.split(key)
    x = jax.random.normal(
        kx, (batch, in_channels, image_size, image_size), dtype=jnp.float32)

    # Module semantics: nn.init.constant_(weight, 1.0).
    w_module = jnp.ones(
        (embed_dim, in_channels, patch_size, patch_size), dtype=jnp.float32)
    # Random weight additionally validates that the (c, ph, pw) K-flattening
    # matches Conv2d's OIHW contraction order (constant weight would not).
    w_rand = jax.random.normal(
        kw, (embed_dim, in_channels, patch_size, patch_size), dtype=jnp.float32)

    def reference(x_, w_):
        # Same bf16-rounded operands as the kernel (which accumulates in f32),
        # rounded to bf16 at the end like the kernel output, so only
        # accumulation-order / boundary-rounding noise remains.
        xr = x_.astype(jnp.bfloat16).astype(jnp.float32)
        wr = w_.astype(jnp.bfloat16).astype(jnp.float32)
        y = jax.lax.conv_general_dilated(
            xr, wr,
            window_strides=(patch_size, patch_size),
            padding="VALID",
            dimension_numbers=("NCHW", "OIHW", "NCHW"),
            precision=jax.lax.Precision.HIGHEST,
        )
        y = y.reshape(x_.shape[0], w_.shape[0], -1).transpose(0, 2, 1)
        return y.astype(jnp.bfloat16).astype(jnp.float32)

    n_patches = (image_size // patch_size) ** 2
    for w in (w_rand, w_module):
        out = patch_embedding_forward(x, w, patch_size)
        out = jax.block_until_ready(out)
        assert out.shape == (batch, n_patches, embed_dim)
        assert out.dtype == jnp.bfloat16
        ref = reference(x, w)
        out_f32 = out.astype(jnp.float32)
        assert jnp.allclose(out_f32, ref, atol=5e-2, rtol=2e-2), float(
            jnp.max(jnp.abs(out_f32 - ref)))

    print("KERNEL_OK")
</pallas_src>

<mosaic_0001>
module attributes {stable_mosaic.version = 11 : i64} {
  func.func @_patch_embed_matmul_kernel(%arg0: i32, %arg1: memref<256x128xbf16, #tpu.memory_space<vmem>>, %arg2: memref<128x128xbf16, #tpu.memory_space<vmem>>, %arg3: memref<256x128xbf16, #tpu.memory_space<vmem>>) attributes {dimension_semantics = [#tpu.dimension_semantics<parallel>], iteration_bounds = array<i64: 1>, scalar_prefetch = 0 : i64, scratch_operands = 0 : i64, tpu.core_type = #tpu.core_type<tc>, window_params = [{transform_indices = @transform_0, window_bounds = array<i64: 256, 128>}, {pipeline_mode = #tpu.pipeline_mode<synchronous>, transform_indices = @transform_1, window_bounds = array<i64: 128, 128>}, {transform_indices = @transform_2, window_bounds = array<i64: 256, 128>}]} {
    %c0 = arith.constant 0 : index
    %c0_0 = arith.constant 0 : index
    %0 = vector.load %arg1[%c0, %c0_0] : memref<256x128xbf16, #tpu.memory_space<vmem>>, vector<256x128xbf16>
    %c0_1 = arith.constant 0 : index
    %c0_2 = arith.constant 0 : index
    %1 = vector.load %arg2[%c0_1, %c0_2] : memref<128x128xbf16, #tpu.memory_space<vmem>>, vector<128x128xbf16>
    %cst = arith.constant dense<0.000000e+00> : vector<256x128xf32>
    %2 = tpu.matmul %0, %1, %cst {dimension_numbers = #tpu.dot_dimension_numbers<[1], [0], [0], [1], [0, 0, 1, 1], [], []>} : vector<256x128xbf16>, vector<128x128xbf16>, vector<256x128xf32> -> vector<256x128xf32>
    %3 = arith.truncf %2 : vector<256x128xf32> to vector<256x128xbf16>
    %c0_3 = arith.constant 0 : index
    %c0_4 = arith.constant 0 : index
    %4 = vector.load %arg3[%c0_3, %c0_4] : memref<256x128xbf16, #tpu.memory_space<vmem>>, vector<256x128xbf16>
    tpu.vector_store %arg3[%c0_3, %c0_4], %3 {strides = array<i32>} : memref<256x128xbf16, #tpu.memory_space<vmem>>, vector<256x128xbf16>,
    return
  }
  func.func @transform_0(%arg0: i32) -> (i32, i32) {
    %c0_i32 = arith.constant 0 : i32
    %c0_i32_0 = arith.constant 0 : i32
    return %arg0, %c0_i32 : i32, i32
  }
  func.func @transform_1(%arg0: i32) -> (i32, i32) {
    %c0_i32 = arith.constant 0 : i32
    %c0_i32_0 = arith.constant 0 : i32
    %c0_i32_1 = arith.constant 0 : i32
    return %c0_i32, %c0_i32_0 : i32, i32
  }
  func.func @transform_2(%arg0: i32) -> (i32, i32) {
    %c0_i32 = arith.constant 0 : i32
    %c0_i32_0 = arith.constant 0 : i32
    return %arg0, %c0_i32 : i32, i32
  }
}

</mosaic_0001>

<bundles_post_ra>
// kernel: tpu_custom_call.1
= control target key start
LH: loop header
LB: loop body
LE: loop exit
PB: predicated region body
PF: predicated region fallthrough
CT: control target
= control target key end

     0   :  { %7 = vsyncpa [#allocation3], 0  ;;  %s976_s0 = inlined_call_operand.hbm [shape: bf16[32,128], index: 0, kind: input, shape index: {}]   ;;  %s977_s1 = inlined_call_operand.hbm [shape: bf16[128,128], index: 1, kind: input, shape index: {}]   ;;  %s978_s2 = inlined_call_operand.hbm [shape: bf16[32,128], index: 2, kind: output, shape index: {}]  }
   0x1   :  { %8 = vsyncpa [#allocation6], 0 }
   0x2   :  { %9 = vsyncpa [#allocation4], 0 }
   0x3   :  { %14 = vsyncadd [#allocation3], 1792  ;;  %s938_s9 = smov [#allocation2]  }
   0x4   :  { %s15_s10 = sshll.u32 %s938_s9, 4  ;;  %s16_s10 = int_to_ptr.vmem [resolvable:$true] %s15_s10 }
   0x5   :  { %s880_s11 = scalar_lea.vmem %s16_s10, 256  ;;  %s884_s12 = scalar_lea.vmem %s16_s10, 2048 }
   0x6   :  { %p881_p0 = scmp.ne.s32.totalorder %s16_s10, %s880_s11  ;;  %p885_p1 = scmp.lt.s32.totalorder %s16_s10, %s16_s10 }
   0x7   :  { %p886_p2 = scmp.lt.s32.totalorder %s884_s12, %s880_s11 }
   0x9   :  { %p887_p3 = por %p886_p2, %p885_p1 }
   0xb   :  { %p888_p4 = pnand %p887_p3, %p881_p0 }
   0xd   :  { %891 = shalt.err (!%p888_p4)
}
   0xe   :  { %s939_s13 = smov 64   ;;  %s940_s14 = smov 4  }
   0xf   :  { %21 = dma.hbm_to_vmem [thread:$0]  %s976_s0, 256, %s16_s10, [#allocation3], %s939_s13, %s939_s13, %s940_s14  }
  0x10   :  { %s941_s17 = smov [#allocation5]  }
  0x11   :  { %s27_s18 = sshll.u32 %s941_s17, 4  ;;  %s28_s18 = int_to_ptr.vmem [resolvable:$true] %s27_s18 }
  0x12   :  { %s900_s19 = scalar_lea.vmem %s28_s18, 1024  ;;  %p905_p6 = scmp.lt.s32.totalorder %s28_s18, %s28_s18 }
  0x13   :  { %p901_p5 = scmp.ne.s32.totalorder %s28_s18, %s900_s19  ;;  %p906_p7 = scmp.lt.s32.totalorder %s900_s19, %s900_s19 }
  0x15   :  { %p907_p8 = por %p906_p7, %p905_p6 }
  0x17   :  { %p908_p9 = pnand %p907_p8, %p901_p5 }
  0x19   :  { %911 = shalt.err (!%p908_p9)
}
  0x1a   :  { %33 = dma.hbm_to_vmem [thread:$0]  %s977_s1, 1024, %s28_s18, [#allocation6], %s939_s13, %s939_s13, %s940_s14  }
  0x1b   :  { %932 = dma.done.wait [#allocation3], 2048  }
  0x1c   :  { %933 = vsyncadd [#allocation3], 4294965248 }
  0x1d   :  { %934 = dma.done.wait [#allocation6], 1024  }
  0x1e   :  { %935 = vsyncadd [#allocation6], 4294966272  ;;  %v848_v0 = vld [vmem:[#allocation5 + $0x38] sm:$0xff]   ;;  %v849_v1 = vld [vmem:[#allocation5 + $0x30] sm:$0xff]  }
  0x1f   :  { %779 = vmatprep.subr.bf16.mxu0 %v848_v0  ;;  %827 = vmatprep.subr.bf16.mxu1 %v848_v0  ;;  %v850_v2 = vld [vmem:[#allocation5 + $0x28] sm:$0xff]   ;;  %v851_v3 = vld [vmem:[#allocation5 + $0x20] sm:$0xff]   ;;  %v852_v6 = vld [vmem:[#allocation5 + $0x18] sm:$0xff]  }
  0x20   :  { %780 = vmatpush3.bf16.msra.mxu0 %v848_v0  ;;  %835 = vmatpush3.bf16.msra.mxu1 %v848_v0  ;;  %v856_v4 = vld [vmem:[#allocation2] sm:$0xff]   ;;  %v853_v7 = vld [vmem:[#allocation5 + $0x10] sm:$0xff]   ;;  %v854_v8 = vld [vmem:[#allocation5 + $0x8] sm:$0xff]  }
  0x21   :  { %781 = vmatprep.subr.bf16.mxu0 %v849_v1  ;;  %828 = vmatprep.subr.bf16.mxu1 %v849_v1  ;;  %v857_v5 = vld [vmem:[#allocation2 + $0x40] sm:$0xff]   ;;  %v858_v10 = vld [vmem:[#allocation2 + $0x8] sm:$0xff]   ;;  %v860_v12 = vld [vmem:[#allocation2 + $0x10] sm:$0xff]  }
  0x22   :  { %795 = vmatprep.mubr.bf16.mxu0 %v856_v4  ;;  %811 = vmatprep.mubr.bf16.mxu1 %v857_v5  ;;  %v855_v9 = vld [vmem:[#allocation5] sm:$0xff]   ;;  %v859_v11 = vld [vmem:[#allocation2 + $0x48] sm:$0xff]   ;;  %v861_v13 = vld [vmem:[#allocation2 + $0x50] sm:$0xff]  }
  0x23   :  { %v862_v14 = vld [vmem:[#allocation2 + $0x18] sm:$0xff]   ;;  %v864_v16 = vld [vmem:[#allocation2 + $0x20] sm:$0xff]   ;;  %v866_v18 = vld [vmem:[#allocation2 + $0x28] sm:$0xff]  }
  0x24   :  { %782 = vmatpush3.bf16.msra.mxu0 %v849_v1  ;;  %836 = vmatpush3.bf16.msra.mxu1 %v849_v1  ;;  %v863_v15 = vld [vmem:[#allocation2 + $0x58] sm:$0xff]   ;;  %v865_v17 = vld [vmem:[#allocation2 + $0x60] sm:$0xff]   ;;  %v867_v19 = vld [vmem:[#allocation2 + $0x68] sm:$0xff]  }
  0x25   :  { %783 = vmatprep.subr.bf16.mxu0 %v850_v2  ;;  %829 = vmatprep.subr.bf16.mxu1 %v850_v2  ;;  %v868_v20 = vld [vmem:[#allocation2 + $0x30] sm:$0xff]   ;;  %v870_v22 = vld [vmem:[#allocation2 + $0x38] sm:$0xff]  }
  0x26   :  { %v869_v21 = vld [vmem:[#allocation2 + $0x70] sm:$0xff]   ;;  %v871_v23 = vld [vmem:[#allocation2 + $0x78] sm:$0xff]  }
  0x28   :  { %784 = vmatpush3.bf16.msra.mxu0 %v850_v2  ;;  %837 = vmatpush3.bf16.msra.mxu1 %v850_v2 }
  0x29   :  { %785 = vmatprep.subr.bf16.mxu0 %v851_v3  ;;  %830 = vmatprep.subr.bf16.mxu1 %v851_v3 }
  0x2c   :  { %786 = vmatpush3.bf16.msra.mxu0 %v851_v3  ;;  %838 = vmatpush3.bf16.msra.mxu1 %v851_v3 }
  0x2d   :  { %787 = vmatprep.subr.bf16.mxu0 %v852_v6  ;;  %831 = vmatprep.subr.bf16.mxu1 %v852_v6 }
  0x30   :  { %788 = vmatpush3.bf16.msra.mxu0 %v852_v6  ;;  %839 = vmatpush3.bf16.msra.mxu1 %v852_v6 }
  0x31   :  { %789 = vmatprep.subr.bf16.mxu0 %v853_v7  ;;  %832 = vmatprep.subr.bf16.mxu1 %v853_v7 }
  0x34   :  { %790 = vmatpush3.bf16.msra.mxu0 %v853_v7  ;;  %840 = vmatpush3.bf16.msra.mxu1 %v853_v7 }
  0x35   :  { %791 = vmatprep.subr.bf16.mxu0 %v854_v8  ;;  %833 = vmatprep.subr.bf16.mxu1 %v854_v8 }
  0x38   :  { %792 = vmatpush3.bf16.msra.mxu0 %v854_v8  ;;  %841 = vmatpush3.bf16.msra.mxu1 %v854_v8 }
  0x39   :  { %793 = vmatprep.subr.bf16.mxu0 %v855_v9  ;;  %834 = vmatprep.subr.bf16.mxu1 %v855_v9 }
  0x3c   :  { %794 = vmatpush3.bf16.msra.mxu0 %v855_v9  ;;  %842 = vmatpush3.bf16.msra.mxu1 %v855_v9 }
  0x3f   :  { %796 = vmatmul.mubr.bf16.vlgmr.msra.gmra.mxu0 %v858_v10  ;;  %812 = vmatmul.mubr.bf16.vlgmr.msra.gmra.mxu1 %v859_v11 }
  0x40   :  { %799 = vmatprep.mubr.bf16.mxu0 %v860_v12  ;;  %815 = vmatprep.mubr.bf16.mxu1 %v861_v13 }
  0x47   :  { %800 = vmatmul.mubr.bf16.gmra.mxu0 %v862_v14  ;;  %816 = vmatmul.mubr.bf16.gmra.mxu1 %v863_v15 }
  0x48   :  { %803 = vmatprep.mubr.bf16.mxu0 %v864_v16  ;;  %819 = vmatprep.mubr.bf16.mxu1 %v865_v17 }
  0x4f   :  { %804 = vmatmul.mubr.bf16.gmra.mxu0 %v866_v18  ;;  %820 = vmatmul.mubr.bf16.gmra.mxu1 %v867_v19 }
  0x50   :  { %807 = vmatprep.mubr.bf16.mxu0 %v868_v20  ;;  %823 = vmatprep.mubr.bf16.mxu1 %v869_v21 }
  0x57   :  { %808 = vmatmul.mubr.bf16.gmra.mxu0 %v870_v22  ;;  %824 = vmatmul.mubr.bf16.gmra.mxu1 %v871_v23 }
  0xff   :  { %v797_v24 = vpop.f32.mrf.mxu0  ;;  %v813_v25 = vpop.f32.mrf.mxu1 }
 0x101   :  { %v267_v26 = vpop.f32.mrf.mxu0  ;;  %v331_v27 = vpop.f32.mrf.mxu1 }
 0x103   :  { %v798_v28 = vpop.f32.mrf.mxu0  ;;  %v814_v29 = vpop.f32.mrf.mxu1 }
 0x104   :  { %v668_v30 = vpack.c.bf16 %v798_v28, %v797_v24  ;;  %v708_v31 = vpack.c.bf16 %v814_v29, %v813_v25 }
 0x105   :  { %v270_v32 = vpop.f32.mrf.mxu0  ;;  %v334_v33 = vpop.f32.mrf.mxu1 }
 0x106   :  { %740 = vst [vmem:[#allocation7 + $0x8] sm:$0xff] %v668_v30   ;;  %748 = vst [vmem:[#allocation7 + $0x48] sm:$0xff] %v708_v31   ;;  %v663_v34 = vpack.c.bf16 %v270_v32, %v267_v26  ;;  %v703_v35 = vpack.c.bf16 %v334_v33, %v331_v27 }
 0x107   :  { %v801_v36 = vpop.f32.mrf.mxu0  ;;  %v817_v37 = vpop.f32.mrf.mxu1 }
 0x108   :  { %664 = vst [vmem:[#allocation7] sm:$0xff] %v663_v34   ;;  %747 = vst [vmem:[#allocation7 + $0x40] sm:$0xff] %v703_v35  }
 0x109   :  { %v283_v38 = vpop.f32.mrf.mxu0  ;;  %v347_v39 = vpop.f32.mrf.mxu1 }
 0x10b   :  { %v802_v40 = vpop.f32.mrf.mxu0  ;;  %v818_v41 = vpop.f32.mrf.mxu1 }
 0x10c   :  { %v678_v42 = vpack.c.bf16 %v802_v40, %v801_v36  ;;  %v718_v43 = vpack.c.bf16 %v818_v41, %v817_v37 }
 0x10d   :  { %v286_v44 = vpop.f32.mrf.mxu0  ;;  %v350_v45 = vpop.f32.mrf.mxu1 }
 0x10e   :  { %742 = vst [vmem:[#allocation7 + $0x18] sm:$0xff] %v678_v42   ;;  %750 = vst [vmem:[#allocation7 + $0x58] sm:$0xff] %v718_v43   ;;  %v673_v46 = vpack.c.bf16 %v286_v44, %v283_v38  ;;  %v713_v47 = vpack.c.bf16 %v350_v45, %v347_v39 }
 0x10f   :  { %v805_v48 = vpop.f32.mrf.mxu0  ;;  %v821_v49 = vpop.f32.mrf.mxu1 }
 0x110   :  { %741 = vst [vmem:[#allocation7 + $0x10] sm:$0xff] %v673_v46   ;;  %749 = vst [vmem:[#allocation7 + $0x50] sm:$0xff] %v713_v47  }
 0x111   :  { %v299_v50 = vpop.f32.mrf.mxu0  ;;  %v363_v51 = vpop.f32.mrf.mxu1 }
 0x113   :  { %v806_v52 = vpop.f32.mrf.mxu0  ;;  %v822_v53 = vpop.f32.mrf.mxu1 }
 0x114   :  { %v688_v54 = vpack.c.bf16 %v806_v52, %v805_v48  ;;  %v728_v55 = vpack.c.bf16 %v822_v53, %v821_v49 }
 0x115   :  { %v302_v56 = vpop.f32.mrf.mxu0  ;;  %v366_v57 = vpop.f32.mrf.mxu1 }
 0x116   :  { %744 = vst [vmem:[#allocation7 + $0x28] sm:$0xff] %v688_v54   ;;  %752 = vst [vmem:[#allocation7 + $0x68] sm:$0xff] %v728_v55   ;;  %v683_v58 = vpack.c.bf16 %v302_v56, %v299_v50  ;;  %v723_v59 = vpack.c.bf16 %v366_v57, %v363_v51 }
 0x117   :  { %v809_v60 = vpop.f32.mrf.mxu0  ;;  %v825_v61 = vpop.f32.mrf.mxu1 }
 0x118   :  { %743 = vst [vmem:[#allocation7 + $0x20] sm:$0xff] %v683_v58   ;;  %751 = vst [vmem:[#allocation7 + $0x60] sm:$0xff] %v723_v59  }
 0x119   :  { %v315_v62 = vpop.f32.mrf.mxu0  ;;  %v379_v63 = vpop.f32.mrf.mxu1 }
 0x11b   :  { %v810_v0 = vpop.f32.mrf.mxu0  ;;  %v826_v1 = vpop.f32.mrf.mxu1 }
 0x11c   :  { %v698_v2 = vpack.c.bf16 %v810_v0, %v809_v60  ;;  %v738_v3 = vpack.c.bf16 %v826_v1, %v825_v61 }
 0x11d   :  { %v318_v4 = vpop.f32.mrf.mxu0  ;;  %v382_v5 = vpop.f32.mrf.mxu1 }
 0x11e   :  { %746 = vst [vmem:[#allocation7 + $0x38] sm:$0xff] %v698_v2   ;;  %754 = vst [vmem:[#allocation7 + $0x78] sm:$0xff] %v738_v3   ;;  %v693_v6 = vpack.c.bf16 %v318_v4, %v315_v62  ;;  %v733_v7 = vpack.c.bf16 %v382_v5, %v379_v63 }
 0x120   :  { %745 = vst [vmem:[#allocation7 + $0x30] sm:$0xff] %v693_v6   ;;  %753 = vst [vmem:[#allocation7 + $0x70] sm:$0xff] %v733_v7  }
 0x121   :  { %558 = vsyncadd [#allocation4], 1792  ;;  %s942_s0 = smov [#allocation7]  }
 0x122   :  { %s559_s1 = sshll.u32 %s942_s0, 4  ;;  %s560_s1 = int_to_ptr.vmem [resolvable:$true] %s559_s1 }
 0x123   :  { %s912_s22 = scalar_lea.vmem %s560_s1, 256  ;;  %s916_s23 = scalar_lea.vmem %s560_s1, 2048 }
 0x124   :  { %p913_p10 = scmp.ne.s32.totalorder %s560_s1, %s912_s22  ;;  %p917_p11 = scmp.lt.s32.totalorder %s560_s1, %s560_s1 }
 0x125   :  { %p918_p12 = scmp.lt.s32.totalorder %s916_s23, %s912_s22 }
 0x127   :  { %p919_p13 = por %p918_p12, %p917_p11 }
 0x129   :  { %p920_p0 = pnand %p919_p13, %p913_p10 }
 0x12b   :  { %923 = shalt.err (!%p920_p0)
}
 0x12c   :  { %565 = dma.vmem_to_hbm [thread:$0]  %s560_s1, 256, %s978_s2, [#allocation4], %s939_s13, %s939_s13, %s940_s14  }
 0x12d   :  { %936 = dma.done.wait [#allocation4], 2048  }
 0x12e   :  { %937 = vsyncadd [#allocation4], 4294965248 }
 0x12f   :  { %569 = vsyncpa [#allocation3], 1 }
 0x130   :  { %570 = vsyncpa [#allocation6], 1 }
 0x131   :  { %571 = vsyncpa [#allocation4], 1 }

</bundles_post_ra>
